<compile_context>
chip_gen: v6e
topology: v6e:2x2x1
jax: 0.10.0
libtpu: 0.0.40
codegen_flags: <defaults>
</compile_context>

<pallas_src>
import functools

import jax
import jax.numpy as jnp
from jax.experimental import pallas as pl
from jax.experimental.pallas import tpu as pltpu

LANES = 128
MAX_BLOCK_ROWS = 2048  # 2048 x 128 x 4B = 1 MiB per f32 input block


def _masked_mse_kernel(p_ref, t_ref, o_ref, acc_ref, *, n_valid, block_rows,
                       inv_n):
    i = pl.program_id(0)

    @pl.when(i == 0)
    def _():
        acc_ref[...] = jnp.zeros_like(acc_ref)

    p = p_ref[...].astype(jnp.float32)
    t = t_ref[...].astype(jnp.float32)

    # Global flat element index of every slot in this block.  Masks both the
    # <=127-element lane padding and any out-of-bounds rows of a partial final
    # block (whose VMEM contents are unspecified).
    row = jax.lax.broadcasted_iota(jnp.int32, p.shape, 0) + i * block_rows
    lane = jax.lax.broadcasted_iota(jnp.int32, p.shape, 1)
    valid = (row * LANES + lane) < n_valid

    mask = jnp.logical_and(valid, t != 0.0)
    diff = jnp.where(mask, p - t, jnp.float32(0.0))
    acc_ref[...] += diff * diff  # elementwise only; no per-step cross-lane reduce

    @pl.when(i == pl.num_programs(0) - 1)
    def _():
        o_ref[0, 0] = jnp.sum(acc_ref[...]) * jnp.float32(inv_n)


def custom_mse_loss(predictions, targets):
    assert predictions.shape == targets.shape
    n = predictions.size

    # Lane-dense (rows, 128) view in the inputs' native dtype.  ravel/reshape
    # are layout no-ops for contiguous inputs; padding (zeros -> masked out)
    # is at most 127 elements and only applied when needed.
    p_flat = jnp.ravel(predictions)
    t_flat = jnp.ravel(targets)
    rows = -(-n // LANES)
    pad = rows * LANES - n
    if pad:
        p_flat = jnp.pad(p_flat, (0, pad))
        t_flat = jnp.pad(t_flat, (0, pad))
    p2d = p_flat.reshape(rows, LANES)
    t2d = t_flat.reshape(rows, LANES)

    if rows <= MAX_BLOCK_ROWS:
        block_rows = rows            # full-extent block, single grid step
        grid = 1
    else:
        block_rows = MAX_BLOCK_ROWS  # multiple of 8 -> (8,128)-aligned
        grid = -(-rows // MAX_BLOCK_ROWS)

    kernel = functools.partial(
        _masked_mse_kernel,
        n_valid=n, block_rows=block_rows, inv_n=1.0 / float(n))

    bytes_accessed = (p2d.size * p2d.dtype.itemsize
                      + t2d.size * t2d.dtype.itemsize + 4)

    out = pl.pallas_call(
        kernel,
        out_shape=jax.ShapeDtypeStruct((1, 1), jnp.float32),
        grid=(grid,),
        in_specs=[
            pl.BlockSpec((block_rows, LANES), lambda i: (i, 0)),
            pl.BlockSpec((block_rows, LANES), lambda i: (i, 0)),
        ],
        out_specs=pl.BlockSpec((1, 1), lambda i: (0, 0),
                               memory_space=pltpu.SMEM),
        scratch_shapes=[pltpu.VMEM((block_rows, LANES), jnp.float32)],
        compiler_params=pltpu.CompilerParams(
            dimension_semantics=("arbitrary",)),
        cost_estimate=pl.CostEstimate(
            flops=3 * n, transcendentals=0, bytes_accessed=bytes_accessed),
    )(p2d, t2d)

    return out[0, 0]


def _reference(predictions, targets):
    mask = targets != 0
    p = jnp.where(mask, predictions, 0.0)
    t = jnp.where(mask, targets, 0.0)
    return jnp.mean((p - t) ** 2)


if __name__ == "__main__":
    key = jax.random.PRNGKey(0)

    def make_case(k, shape):
        kp, kt, km = jax.random.split(k, 3)
        preds = jax.random.normal(kp, shape, dtype=jnp.float32)
        raw_t = jax.random.normal(kt, shape, dtype=jnp.float32)
        zero_mask = jax.random.bernoulli(km, p=0.3, shape=shape)
        tgts = jnp.where(zero_mask, 0.0, raw_t)
        return preds, tgts

    k0, k1, k2 = jax.random.split(key, 3)

    # Primary case: small NCHW shape implied by the module.
    preds, tgts = make_case(k0, (2, 4, 16, 16))
    loss = custom_mse_loss(preds, tgts)
    jax.block_until_ready(loss)
    ref = _reference(preds, tgts)
    assert jnp.allclose(loss, ref, rtol=1e-5, atol=1e-6), (loss, ref)

    # Ragged tail (n not a multiple of 128) -> exercises the validity mask.
    preds, tgts = make_case(k1, (3, 7, 11, 13))
    loss = custom_mse_loss(preds, tgts)
    ref = _reference(preds, tgts)
    assert jnp.allclose(loss, ref, rtol=1e-5, atol=1e-6), (loss, ref)

    # Multi-block path with a partial final block (grid > 1).
    preds, tgts = make_case(k2, (2, 4, 190, 191))
    loss = custom_mse_loss(preds, tgts)
    jax.block_until_ready(loss)
    ref = _reference(preds, tgts)
    assert jnp.allclose(loss, ref, rtol=1e-5, atol=1e-6), (loss, ref)

    print("KERNEL_OK")
</pallas_src>

<mosaic_0001>
module attributes {stable_mosaic.version = 11 : i64} {
  func.func @_masked_mse_kernel(%arg0: i32, %arg1: memref<16x128xf32, #tpu.memory_space<vmem>>, %arg2: memref<16x128xf32, #tpu.memory_space<vmem>>, %arg3: memref<1x1xf32, #tpu.memory_space<smem>>, %arg4: memref<16x128xf32, #tpu.memory_space<vmem>>) attributes {dimension_semantics = [#tpu.dimension_semantics<arbitrary>], iteration_bounds = array<i64: 1>, scalar_prefetch = 0 : i64, scratch_operands = 1 : i64, tpu.core_type = #tpu.core_type<tc>, window_params = [{transform_indices = @transform_0, window_bounds = array<i64: 16, 128>}, {transform_indices = @transform_1, window_bounds = array<i64: 16, 128>}, {transform_indices = @transform_2, window_bounds = array<i64: 1, 1>}]} {
    %c0_i32 = arith.constant 0 : i32
    %0 = arith.cmpi eq, %arg0, %c0_i32 : i32
    %1 = arith.extui %0 : i1 to i32
    %c0_i32_0 = arith.constant 0 : i32
    %2 = arith.cmpi ne, %1, %c0_i32_0 : i32
    scf.if %2 {
      %cst_11 = arith.constant 0.000000e+00 : f32
      %28 = vector.broadcast %cst_11 : f32 to vector<16x128xf32>
      %c0_12 = arith.constant 0 : index
      %c0_13 = arith.constant 0 : index
      %29 = vector.load %arg4[%c0_12, %c0_13] : memref<16x128xf32, #tpu.memory_space<vmem>>, vector<16x128xf32>
      tpu.vector_store %arg4[%c0_12, %c0_13], %28 {strides = array<i32>} : memref<16x128xf32, #tpu.memory_space<vmem>>, vector<16x128xf32>,
    } else {
    }
    %c0 = arith.constant 0 : index
    %c0_1 = arith.constant 0 : index
    %3 = vector.load %arg1[%c0, %c0_1] : memref<16x128xf32, #tpu.memory_space<vmem>>, vector<16x128xf32>
    %c0_2 = arith.constant 0 : index
    %c0_3 = arith.constant 0 : index
    %4 = vector.load %arg2[%c0_2, %c0_3] : memref<16x128xf32, #tpu.memory_space<vmem>>, vector<16x128xf32>
    %5 = tpu.iota {dimensions = array<i32: 0>} : vector<16x128xi32>
    %c16_i32 = arith.constant 16 : i32
    %6 = arith.muli %arg0, %c16_i32 : i32
    %7 = vector.broadcast %6 : i32 to vector<16x128xi32>
    %8 = arith.addi %5, %7 : vector<16x128xi32>
    %9 = tpu.iota {dimensions = array<i32: 1>} : vector<16x128xi32>
    %c128_i32 = arith.constant 128 : i32
    %10 = vector.broadcast %c128_i32 : i32 to vector<16x128xi32>
    %11 = arith.muli %8, %10 : vector<16x128xi32>
    %12 = arith.addi %11, %9 : vector<16x128xi32>
    %c2048_i32 = arith.constant 2048 : i32
    %13 = vector.broadcast %c2048_i32 : i32 to vector<16x128xi32>
    %14 = arith.cmpi slt, %12, %13 : vector<16x128xi32>
    %cst = arith.constant 0.000000e+00 : f32
    %15 = vector.broadcast %cst : f32 to vector<16x128xf32>
    %16 = arith.cmpf one, %4, %15 : vector<16x128xf32>
    %17 = arith.andi %14, %16 : vector<16x128xi1>
    %18 = arith.subf %3, %4 : vector<16x128xf32>
    %cst_4 = arith.constant 0.000000e+00 : f32
    %19 = vector.broadcast %cst_4 : f32 to vector<16x128xf32>
    %20 = arith.select %17, %18, %19 : vector<16x128xi1>, vector<16x128xf32>
    %c0_5 = arith.constant 0 : index
    %c0_6 = arith.constant 0 : index
    %21 = vector.load %arg4[%c0_5, %c0_6] : memref<16x128xf32, #tpu.memory_space<vmem>>, vector<16x128xf32>
    %22 = arith.mulf %20, %20 : vector<16x128xf32>
    %23 = arith.addf %21, %22 : vector<16x128xf32>
    %c0_7 = arith.constant 0 : index
    %c0_8 = arith.constant 0 : index
    %24 = vector.load %arg4[%c0_7, %c0_8] : memref<16x128xf32, #tpu.memory_space<vmem>>, vector<16x128xf32>
    tpu.vector_store %arg4[%c0_7, %c0_8], %23 {strides = array<i32>} : memref<16x128xf32, #tpu.memory_space<vmem>>, vector<16x128xf32>,
    %c0_i32_9 = arith.constant 0 : i32
    %25 = arith.cmpi eq, %arg0, %c0_i32_9 : i32
    %26 = arith.extui %25 : i1 to i32
    %c0_i32_10 = arith.constant 0 : i32
    %27 = arith.cmpi ne, %26, %c0_i32_10 : i32
    scf.if %27 {
      %c0_11 = arith.constant 0 : index
      %c0_12 = arith.constant 0 : index
      %28 = vector.load %arg4[%c0_11, %c0_12] : memref<16x128xf32, #tpu.memory_space<vmem>>, vector<16x128xf32>
      %29 = vector.shape_cast %28 : vector<16x128xf32> to vector<1x16x128xf32>
      %cst_13 = arith.constant dense<0.000000e+00> : vector<1xf32>
      %30 = vector.multi_reduction <add>, %29, %cst_13 [1, 2] : vector<1x16x128xf32> to vector<1xf32>
      %31 = vector.shape_cast %30 : vector<1xf32> to vector<1x1x1xf32>
      %32 = vector.extract %31[0, 0, 0] : f32 from vector<1x1x1xf32>
      %cst_14 = arith.constant 4.8828125E-4 : f32
      %33 = arith.mulf %32, %cst_14 : f32
      %c0_15 = arith.constant 0 : index
      %c0_16 = arith.constant 0 : index
      %34 = memref.load %arg3[%c0_15, %c0_16] : memref<1x1xf32, #tpu.memory_space<smem>>
      memref.store %33, %arg3[%c0_15, %c0_16] : memref<1x1xf32, #tpu.memory_space<smem>>
    } else {
    }
    return
  }
  func.func @transform_0(%arg0: i32) -> (i32, i32) {
    %c0_i32 = arith.constant 0 : i32
    %c0_i32_0 = arith.constant 0 : i32
    return %arg0, %c0_i32 : i32, i32
  }
  func.func @transform_1(%arg0: i32) -> (i32, i32) {
    %c0_i32 = arith.constant 0 : i32
    %c0_i32_0 = arith.constant 0 : i32
    return %arg0, %c0_i32 : i32, i32
  }
  func.func @transform_2(%arg0: i32) -> (i32, i32) {
    %c0_i32 = arith.constant 0 : i32
    %c0_i32_0 = arith.constant 0 : i32
    %c0_i32_1 = arith.constant 0 : i32
    return %c0_i32, %c0_i32_0 : i32, i32
  }
}

</mosaic_0001>

<bundles_post_ra>
// kernel: tpu_custom_call.1
= control target key start
LH: loop header
LB: loop body
LE: loop exit
PB: predicated region body
PF: predicated region fallthrough
CT: control target
= control target key end

     0   :  { %7 = vsyncpa [#allocation4], 0  ;;  %s204_s0 = inlined_call_operand.hbm [shape: f32[16,128], index: 0, kind: input, shape index: {}]   ;;  %s205_s1 = inlined_call_operand.hbm [shape: f32[16,128], index: 1, kind: input, shape index: {}]   ;;  %s206_s2 = inlined_call_operand.hbm [shape: f32[1,1], index: 2, kind: output, shape index: {}]  }
   0x1   :  { %8 = vsyncpa [#allocation7], 0 }
   0x2   :  { %9 = vsyncpa [#allocation5], 0  ;;  %s175_s9 = smov [#allocation3]  }
   0x3   :  { %s15_s10 = sshll.u32 %s175_s9, 4  ;;  %s16_s10 = int_to_ptr.vmem [resolvable:$true] %s15_s10 }
   0x4   :  { %s129_s11 = scalar_lea.vmem %s16_s10, 256  ;;  %p134_p1 = scmp.lt.s32.totalorder %s16_s10, %s16_s10 }
   0x5   :  { %p130_p0 = scmp.ne.s32.totalorder %s16_s10, %s129_s11  ;;  %p135_p2 = scmp.lt.s32.totalorder %s129_s11, %s129_s11 }
   0x7   :  { %p136_p3 = por %p135_p2, %p134_p1 }
   0x9   :  { %p137_p4 = pnand %p136_p3, %p130_p0 }
   0xb   :  { %140 = shalt.err (!%p137_p4)
}
   0xc   :  { %s176_s12 = smov 128   ;;  %s177_s13 = smov 8  }
   0xd   :  { %21 = dma.hbm_to_vmem [thread:$0]  %s204_s0, 256, %s16_s10, [#allocation4], %s176_s12, %s176_s12, %s177_s13  }
   0xe   :  { %s178_s16 = smov [#allocation6]  }
   0xf   :  { %s27_s17 = sshll.u32 %s178_s16, 4  ;;  %s28_s17 = int_to_ptr.vmem [resolvable:$true] %s27_s17 }
  0x10   :  { %s149_s18 = scalar_lea.vmem %s28_s17, 256  ;;  %p154_p6 = scmp.lt.s32.totalorder %s28_s17, %s28_s17 }
  0x11   :  { %p150_p5 = scmp.ne.s32.totalorder %s28_s17, %s149_s18  ;;  %p155_p7 = scmp.lt.s32.totalorder %s149_s18, %s149_s18 }
  0x13   :  { %p156_p8 = por %p155_p7, %p154_p6 }
  0x15   :  { %p157_p9 = pnand %p156_p8, %p150_p5 }
  0x17   :  { %160 = shalt.err (!%p157_p9)
}
  0x18   :  { %33 = dma.hbm_to_vmem [thread:$0]  %s205_s1, 256, %s28_s17, [#allocation7], %s176_s12, %s176_s12, %s177_s13  }
  0x19   :  { %169 = dma.done.wait [#allocation4], 256  }
  0x1a   :  { %170 = vsyncadd [#allocation4], 4294967040 }
  0x1b   :  { %171 = dma.done.wait [#allocation7], 256  }
  0x1c   :  { %172 = vsyncadd [#allocation7], 4294967040  ;;  %v50_v0 = vlaneseq  ;;  %v46_v7 = vld [vmem:[#allocation3] sm:$0xff]  ;;  %v47_v8 = vld [vmem:[#allocation3 + $0x8] sm:$0xff]  ;;  %s179_s21 = smov [#allocation8]  }
  0x1d   :  { %v48_v9 = vld [vmem:[#allocation6] sm:$0xff]  ;;  %v49_v10 = vld [vmem:[#allocation6 + $0x8] sm:$0xff] }
  0x1e   :  { %v51_v1 = vshrl.u32 %v50_v0, 7  ;;  %v58_v2 = vand.u32 127, %v50_v0  ;;  %vm65_vm1 = vcmp.ne.f32.partialorder %v48_v9, 0.0  ;;  %v69_v12 = vsub.f32 %v46_v7, %v48_v9 }
  0x1f   :  { %vm66_vm2 = vcmp.ne.f32.partialorder %v49_v10, 0.0  ;;  %v70_v13 = vsub.f32 %v47_v8, %v49_v10 }
  0x20   :  { %v52_v3 = vadd.s32 8, %v51_v1  ;;  %v59_v4 = vmul.u32 128, %v51_v1 }
  0x22   :  { %v60_v5 = vmul.u32 128, %v52_v3  ;;  %v61_v6 = vadd.s32 %v59_v4, %v58_v2 }
  0x24   :  { %v62_v11 = vadd.s32 %v60_v5, %v58_v2  ;;  %vm63_vm0 = vcmp.lt.s32.totalorder %v61_v6, 2048 }
  0x25   :  { %vm67_vm3 = vmand %vm63_vm0, %vm65_vm1 }
  0x26   :  { %vm64_vm4 = vcmp.lt.s32.totalorder %v62_v11, 2048  ;;  %v71_v14 = vsel %vm67_vm3, %v69_v12, 0.0 }
  0x27   :  { %vm68_vm5 = vmand %vm64_vm4, %vm66_vm2  ;;  %v75_v15 = vmul.f32 %v71_v14, %v71_v14 }
  0x28   :  { %v72_v16 = vsel %vm68_vm5, %v70_v13, 0.0 }
  0x29   :  { %v76_v17 = vmul.f32 %v72_v16, %v72_v16 }
  0x2b   :  { %v86_v18 = vadd.f32 %v76_v17, %v75_v15 }
  0x2d   :  { %87 = vadd.xlane.f32.xlu0 %v86_v18 }
  0xb6   :  { %v88_v19 = vpop.xlane.xlu0 %87 }
  0xb7   :  { %v89_v20 = vrot.slane %v88_v19, 4 }
  0xb9   :  { %v90_v21 = vadd.f32 %v89_v20, %v88_v19 }
  0xbb   :  { %v91_v22 = vrot.slane %v90_v21, 2 }
  0xbd   :  { %v92_v23 = vadd.f32 %v91_v22, %v90_v21 }
  0xbf   :  { %v93_v24 = vrot.slane %v92_v23, 1 }
  0xc1   :  { %v94_v25 = vadd.f32 %v93_v24, %v92_v23 }
  0xc3   :  { %114 = vpush %v94_v25 }
  0xf4   :  { %s115_s0 = spop %114 }
  0xf5   :  { %s96_s1 = smul.f32 0.00048828125, %s115_s0 }
  0xf7   :  { %98 = sst [smem:[#allocation8]] %s96_s1 }
  0xf8   :  { %106 = dma.smem_to_hbm %s179_s21, 16, %s206_s2, [#allocation5]  }
  0xf9   :  { %173 = dma.done.wait [#allocation5], 16  }
  0xfa   :  { %174 = vsyncadd [#allocation5], 4294967280 }
  0xfb   :  { %110 = sfence }
  0xfc   :  { %111 = vsyncpa [#allocation4], 1 }
  0xfd   :  { %112 = vsyncpa [#allocation7], 1 }
  0xfe   :  { %113 = vsyncpa [#allocation5], 1 }

</bundles_post_ra>
